<compile_context>
chip_gen: v5e
topology: v5e:2x2
jax: 0.10.0
libtpu: 0.0.40
codegen_flags: <defaults>
</compile_context>

<pallas_src>
import functools

import jax
import jax.numpy as jnp
from jax.experimental import pallas as pl
from jax.experimental.pallas import tpu as pltpu

_EPS = 1e-5
_VMEM_LIMIT = 32 * 1024 * 1024  # explicit scoped-VMEM budget, safe on v5e/v6e/v7x


def _conv_preact(x_ref, w_ref):
    """Fused conv pre-activation for one (C, L) sequence: (2C,3C) @ (3C,L) -> (2C,L) f32."""
    xb = x_ref[...]                                           # (C, L)
    C, L = xb.shape
    zc = jnp.zeros((C, 1), xb.dtype)
    # k=3, pad=1 halo built from the resident tile (zeros at the sequence ends).
    s_prev = jnp.concatenate([zc, xb[:, :L - 1]], axis=1)     # x[:, l-1]
    s_next = jnp.concatenate([xb[:, 1:], zc], axis=1)         # x[:, l+1]
    xs = jnp.concatenate([s_prev, xb, s_next], axis=0)        # (3C, L), taps major
    return jnp.dot(w_ref[...], xs.astype(w_ref.dtype),
                   preferred_element_type=jnp.float32)        # (2C, L) f32


def _stats_kernel(w_ref, x_ref, stats_ref):
    """Pass 1: accumulate per-channel sum / sum-of-squares of the conv pre-activations."""
    b = pl.program_id(0)

    @pl.when(b == 0)
    def _init():
        stats_ref[...] = jnp.zeros_like(stats_ref)

    pre = _conv_preact(x_ref, w_ref)                          # (2C, L) f32
    ssum = jnp.sum(pre, axis=1, keepdims=True)                # (2C, 1)
    ssq = jnp.sum(pre * pre, axis=1, keepdims=True)           # (2C, 1)
    stats_ref[...] += jnp.concatenate([ssum, ssq], axis=1)    # (2C, 2)


def _gated_out(w_ref, gamma_ref, beta_ref, stats_ref, x_ref, count):
    """Pass-2 body: conv -> BN(batch stats) -> tanh * sigmoid for one (C, L) tile."""
    pre = _conv_preact(x_ref, w_ref)                          # (2C, L) f32
    C = x_ref.shape[0]
    inv_n = 1.0 / float(count)
    mean = stats_ref[:, 0:1] * inv_n                          # (2C, 1)
    var = stats_ref[:, 1:2] * inv_n - mean * mean             # biased var (train BN)
    scale = gamma_ref[...] * jax.lax.rsqrt(var + _EPS)        # fold gamma/mean/var once
    shift = beta_ref[...] - mean * scale
    norm = pre * scale + shift                                # (2C, L)
    return jnp.tanh(norm[:C, :]) * jax.nn.sigmoid(norm[C:, :])  # (C, L) f32


def _finalize_shared_kernel(w_ref, gamma_ref, beta_ref, stats_ref, x_ref,
                            out_ref, *, count):
    out = _gated_out(w_ref, gamma_ref, beta_ref, stats_ref, x_ref, count)
    out_ref[...] = (out * x_ref[...].astype(jnp.float32)).astype(out_ref.dtype)


def _finalize_pair_kernel(w_ref, gamma_ref, beta_ref, stats_ref, x_ref, r_ref,
                          out_x_ref, out_r_ref, *, count):
    out = _gated_out(w_ref, gamma_ref, beta_ref, stats_ref, x_ref, count)
    out_x_ref[...] = (out * x_ref[...].astype(jnp.float32)).astype(out_x_ref.dtype)
    out_r_ref[...] = (out * r_ref[...].astype(jnp.float32)).astype(out_r_ref.dtype)


def init_params(channels, key):
    """Deterministic params mirroring torch GatedConv(channels, channels).

    Conv1d weights keep the torch (C_out, C_in, k=3) layout; BN gamma=1, beta=0.
    Conv biases are kept for torch parity but are a no-op under train-mode BN."""
    k = 3
    keys = jax.random.split(key, 4)
    bound = 1.0 / (channels * k) ** 0.5
    return dict(
        w_conv=jax.random.uniform(keys[0], (channels, channels, k), jnp.float32, -bound, bound),
        b_conv=jax.random.uniform(keys[1], (channels,), jnp.float32, -bound, bound),
        gamma_conv=jnp.ones((channels,), jnp.float32),
        beta_conv=jnp.zeros((channels,), jnp.float32),
        w_gate=jax.random.uniform(keys[2], (channels, channels, k), jnp.float32, -bound, bound),
        b_gate=jax.random.uniform(keys[3], (channels,), jnp.float32, -bound, bound),
        gamma_gate=jnp.ones((channels,), jnp.float32),
        beta_gate=jnp.zeros((channels,), jnp.float32),
    )


def gated_residual_conv(x_ncl, params, r_ncl=None):
    """Forward of GatedResidualConv.  x_ncl: (B, C, L) NCL, exactly like PyTorch."""
    B, C, L = x_ncl.shape
    share_r = r_ncl is None

    # Fuse the two Conv1d weights into a single (2C, 3C) matrix:
    #   W2[co, k*C + ci] = W[co, ci, k]   (taps major, matching the stacked XS rows).
    def _flat(w):  # (C_out, C_in, 3) -> (C_out, 3*C_in)
        return jnp.transpose(w, (0, 2, 1)).reshape(C, 3 * C)

    w2 = jnp.concatenate([_flat(params["w_conv"]), _flat(params["w_gate"])], axis=0)
    gamma = jnp.concatenate([params["gamma_conv"], params["gamma_gate"]]).reshape(2 * C, 1)
    beta = jnp.concatenate([params["beta_conv"], params["beta_gate"]]).reshape(2 * C, 1)
    # NOTE: b_conv / b_gate are mathematically cancelled by train-mode BatchNorm
    # (per-channel constants are removed by the mean), so they never enter the kernel.

    seq_spec = pl.BlockSpec((None, C, L), lambda b: (b, 0, 0))     # one (C, L) sequence
    w_spec = pl.BlockSpec((2 * C, 3 * C), lambda b: (0, 0))        # resident, fetched once
    vec_spec = pl.BlockSpec((2 * C, 1), lambda b: (0, 0))
    stats_spec = pl.BlockSpec((2 * C, 2), lambda b: (0, 0))

    itemsize = x_ncl.dtype.itemsize
    matmul_flops = 2 * B * L * (3 * C) * (2 * C)
    param_bytes = int(w2.size * 4 + 4 * 2 * C * 4 + 2 * C * 2 * 4)

    # ---- pass 1: per-channel sum / sum-of-squares of the conv pre-activations -------
    stats = pl.pallas_call(
        _stats_kernel,
        grid=(B,),
        in_specs=[w_spec, seq_spec],
        out_specs=stats_spec,
        out_shape=jax.ShapeDtypeStruct((2 * C, 2), jnp.float32),
        compiler_params=pltpu.CompilerParams(
            dimension_semantics=("arbitrary",),            # resident accumulator output
            vmem_limit_bytes=_VMEM_LIMIT),
        cost_estimate=pl.CostEstimate(
            flops=matmul_flops, transcendentals=0,
            bytes_accessed=int(B * C * L * itemsize) + param_bytes),
    )(w2, x_ncl)

    # ---- pass 2: normalize + gate + residual multiplies (batch axis -> megacore) ----
    count = B * L
    common_inputs = (w2, gamma, beta, stats)
    common_specs = [w_spec, vec_spec, vec_spec, stats_spec]

    if share_r:
        out_x = pl.pallas_call(
            functools.partial(_finalize_shared_kernel, count=count),
            grid=(B,),
            in_specs=common_specs + [seq_spec],
            out_specs=seq_spec,
            out_shape=jax.ShapeDtypeStruct((B, C, L), x_ncl.dtype),
            compiler_params=pltpu.CompilerParams(
                dimension_semantics=("parallel",),
                vmem_limit_bytes=_VMEM_LIMIT),
            cost_estimate=pl.CostEstimate(
                flops=matmul_flops + 8 * B * C * L,
                transcendentals=2 * B * C * L,
                bytes_accessed=int(2 * B * C * L * itemsize) + param_bytes),
        )(*common_inputs, x_ncl)
        return out_x, out_x            # r is x -> the two outputs are identical

    out_x, out_r = pl.pallas_call(
        functools.partial(_finalize_pair_kernel, count=count),
        grid=(B,),
        in_specs=common_specs + [seq_spec, seq_spec],
        out_specs=(seq_spec, seq_spec),
        out_shape=(jax.ShapeDtypeStruct((B, C, L), x_ncl.dtype),
                   jax.ShapeDtypeStruct((B, C, L), r_ncl.dtype)),
        compiler_params=pltpu.CompilerParams(
            dimension_semantics=("parallel",),
            vmem_limit_bytes=_VMEM_LIMIT),
        cost_estimate=pl.CostEstimate(
            flops=matmul_flops + 10 * B * C * L,
            transcendentals=2 * B * C * L,
            bytes_accessed=int(4 * B * C * L * itemsize) + param_bytes),
    )(*common_inputs, x_ncl, r_ncl)
    return out_x, out_r


def _reference(x, params, r):
    """Pure-JAX reference of the torch forward (train-mode BN), for validation."""
    L = x.shape[2]

    def branch(w, b, gamma, beta):
        xp = jnp.pad(x, ((0, 0), (0, 0), (1, 1)))
        y = b[None, :, None] + sum(
            jnp.einsum("oi,nil->nol", w[:, :, k], xp[:, :, k:k + L]) for k in range(3))
        mean = y.mean(axis=(0, 2), keepdims=True)
        var = ((y - mean) ** 2).mean(axis=(0, 2), keepdims=True)
        yhat = (y - mean) * jax.lax.rsqrt(var + _EPS)
        return yhat * gamma[None, :, None] + beta[None, :, None]

    out = (jnp.tanh(branch(params["w_conv"], params["b_conv"],
                           params["gamma_conv"], params["beta_conv"]))
           * jax.nn.sigmoid(branch(params["w_gate"], params["b_gate"],
                                   params["gamma_gate"], params["beta_gate"])))
    return out * x, out * r


if __name__ == "__main__":
    B, C, L = 2, 8, 128                       # NCL; L multiple of 128 -> lane-dense stores
    key = jax.random.PRNGKey(0)
    kx, kr, kp = jax.random.split(key, 3)
    x = jax.random.normal(kx, (B, C, L), jnp.float32)
    r = jax.random.normal(kr, (B, C, L), jnp.float32)
    params = init_params(C, kp)

    out_x, out_r = gated_residual_conv(x, params)          # r defaults to x (shared path)
    out_x2, out_r2 = gated_residual_conv(x, params, r)     # distinct residual path
    jax.block_until_ready((out_x, out_r, out_x2, out_r2))

    assert out_x.shape == (B, C, L) and out_r.shape == (B, C, L)
    assert out_x2.shape == (B, C, L) and out_r2.shape == (B, C, L)

    ref_sx, ref_sr = _reference(x, params, x)
    ref_x, ref_r = _reference(x, params, r)
    for got, want in ((out_x, ref_sx), (out_r, ref_sr), (out_x2, ref_x), (out_r2, ref_r)):
        err = float(jnp.max(jnp.abs(got - want)))
        assert jnp.allclose(got, want, atol=1e-3, rtol=1e-3), f"max abs err {err}"

    print("KERNEL_OK")
</pallas_src>

<mosaic_0001>
module attributes {stable_mosaic.version = 11 : i64} {
  func.func @_stats_kernel(%arg0: i32, %arg1: memref<16x24xf32, #tpu.memory_space<vmem>>, %arg2: memref<1x8x128xf32, #tpu.memory_space<vmem>>, %arg3: memref<16x2xf32, #tpu.memory_space<vmem>>) attributes {dimension_semantics = [#tpu.dimension_semantics<arbitrary>], iteration_bounds = array<i64: 2>, scalar_prefetch = 0 : i64, scratch_operands = 0 : i64, tpu.core_type = #tpu.core_type<tc>, window_params = [{pipeline_mode = #tpu.pipeline_mode<synchronous>, transform_indices = @transform_0, window_bounds = array<i64: 16, 24>}, {transform_indices = @transform_1, window_bounds = array<i64: 1, 8, 128>}, {pipeline_mode = #tpu.pipeline_mode<synchronous>, transform_indices = @transform_2, window_bounds = array<i64: 16, 2>}]} {
    %c0_i32 = arith.constant 0 : i32
    %0 = arith.cmpi eq, %arg0, %c0_i32 : i32
    %1 = arith.extui %0 : i1 to i32
    %c0_i32_0 = arith.constant 0 : i32
    %2 = arith.cmpi ne, %1, %c0_i32_0 : i32
    scf.if %2 {
      %cst_12 = arith.constant 0.000000e+00 : f32
      %22 = vector.broadcast %cst_12 : f32 to vector<16x2xf32>
      %c0_13 = arith.constant 0 : index
      %c0_14 = arith.constant 0 : index
      %23 = vector.load %arg3[%c0_13, %c0_14] : memref<16x2xf32, #tpu.memory_space<vmem>>, vector<16x2xf32>
      tpu.vector_store %arg3[%c0_13, %c0_14], %22 {strides = array<i32>} : memref<16x2xf32, #tpu.memory_space<vmem>>, vector<16x2xf32>,
    } else {
    }
    %c0 = arith.constant 0 : index
    %c0_1 = arith.constant 0 : index
    %c0_2 = arith.constant 0 : index
    %3 = vector.load %arg2[%c0, %c0_1, %c0_2] : memref<1x8x128xf32, #tpu.memory_space<vmem>>, vector<1x8x128xf32>
    %4 = vector.shape_cast %3 : vector<1x8x128xf32> to vector<8x128xf32>
    %cst = arith.constant 0.000000e+00 : f32
    %5 = vector.broadcast %cst : f32 to vector<8x1xf32>
    %6 = vector.extract_strided_slice %4 {offsets = [0, 0], sizes = [8, 127], strides = [1, 1]} : vector<8x128xf32> to vector<8x127xf32>
    %7 = tpu.concatenate %5, %6 in 1 : vector<8x1xf32>, vector<8x127xf32> -> vector<8x128xf32>
    %8 = vector.extract_strided_slice %4 {offsets = [0, 1], sizes = [8, 127], strides = [1, 1]} : vector<8x128xf32> to vector<8x127xf32>
    %9 = tpu.concatenate %8, %5 in 1 : vector<8x127xf32>, vector<8x1xf32> -> vector<8x128xf32>
    %10 = tpu.concatenate %7, %4, %9 in 0 : vector<8x128xf32>, vector<8x128xf32>, vector<8x128xf32> -> vector<24x128xf32>
    %c0_3 = arith.constant 0 : index
    %c0_4 = arith.constant 0 : index
    %11 = vector.load %arg1[%c0_3, %c0_4] : memref<16x24xf32, #tpu.memory_space<vmem>>, vector<16x24xf32>
    %cst_5 = arith.constant dense<0.000000e+00> : vector<16x128xf32>
    %12 = tpu.matmul %11, %10, %cst_5 {dimension_numbers = #tpu.dot_dimension_numbers<[1], [0], [0], [1], [0, 0, 1, 1], [], []>} : vector<16x24xf32>, vector<24x128xf32>, vector<16x128xf32> -> vector<16x128xf32>
    %cst_6 = arith.constant dense<0.000000e+00> : vector<16xf32>
    %13 = vector.multi_reduction <add>, %12, %cst_6 [1] : vector<16x128xf32> to vector<16xf32>
    %14 = vector.shape_cast %13 : vector<16xf32> to vector<16x1xf32>
    %15 = arith.mulf %12, %12 : vector<16x128xf32>
    %cst_7 = arith.constant dense<0.000000e+00> : vector<16xf32>
    %16 = vector.multi_reduction <add>, %15, %cst_7 [1] : vector<16x128xf32> to vector<16xf32>
    %17 = vector.shape_cast %16 : vector<16xf32> to vector<16x1xf32>
    %c0_8 = arith.constant 0 : index
    %c0_9 = arith.constant 0 : index
    %18 = vector.load %arg3[%c0_8, %c0_9] : memref<16x2xf32, #tpu.memory_space<vmem>>, vector<16x2xf32>
    %19 = tpu.concatenate %14, %17 in 1 : vector<16x1xf32>, vector<16x1xf32> -> vector<16x2xf32>
    %20 = arith.addf %18, %19 : vector<16x2xf32>
    %c0_10 = arith.constant 0 : index
    %c0_11 = arith.constant 0 : index
    %21 = vector.load %arg3[%c0_10, %c0_11] : memref<16x2xf32, #tpu.memory_space<vmem>>, vector<16x2xf32>
    tpu.vector_store %arg3[%c0_10, %c0_11], %20 {strides = array<i32>} : memref<16x2xf32, #tpu.memory_space<vmem>>, vector<16x2xf32>,
    return
  }
  func.func @transform_0(%arg0: i32) -> (i32, i32) {
    %c0_i32 = arith.constant 0 : i32
    %c0_i32_0 = arith.constant 0 : i32
    %c0_i32_1 = arith.constant 0 : i32
    return %c0_i32, %c0_i32_0 : i32, i32
  }
  func.func @transform_1(%arg0: i32) -> (i32, i32, i32) {
    %c0_i32 = arith.constant 0 : i32
    %c0_i32_0 = arith.constant 0 : i32
    %c0_i32_1 = arith.constant 0 : i32
    return %arg0, %c0_i32, %c0_i32_0 : i32, i32, i32
  }
  func.func @transform_2(%arg0: i32) -> (i32, i32) {
    %c0_i32 = arith.constant 0 : i32
    %c0_i32_0 = arith.constant 0 : i32
    %c0_i32_1 = arith.constant 0 : i32
    return %c0_i32, %c0_i32_0 : i32, i32
  }
}

</mosaic_0001>

<bundles_post_ra>
// kernel: tpu_custom_call.1
= control target key start
LH: loop header
LB: loop body
LE: loop exit
PB: predicated region body
PF: predicated region fallthrough
CT: control target
= control target key end

     0   :  { %7 = vsyncpa [#allocation3], 0  ;;  %s608_s0 = inlined_call_operand.hbm [shape: f32[16,24], index: 0, kind: input, shape index: {}]   ;;  %s609_s1 = inlined_call_operand.hbm [shape: f32[2,8,128], index: 1, kind: input, shape index: {}]   ;;  %s610_s2 = inlined_call_operand.vmem [shape: f32[16,2], index: 2, kind: output, shape index: {}]  }
   0x1   :  { %8 = vsyncpa [#allocation5], 0 }
   0x2   :  { %10 = vsyncpa [#allocation5 + $0x1], 0  ;;  %s482_s9 = smov 0   ;;  %s484_s10 = smov 0  }
   0x3   :  { %s486_s11 = smov 0   ;;  %s488_s12 = smov 0  }
   0x4 LB: > { %s100_s15 = sshll.u32 %s608_s0, 4  ;;  %s286_s16 = sadd.s32 4294967295, %s459_s12   ;;  %s459_s12 = sphi %s488_s12, %s619_s12   ;;  %s455_s11 = sphi %s486_s11, %s618_s11   ;;  %s451_s10 = sphi %s484_s10, %s617_s10   ;;  %s447_s9 = sphi %s482_s9, %s616_s9   ;;  %s101_s15 = int_to_ptr.hbm [resolvable:$true] %s100_s15 }
   0x5   : > { %p287_p0 = scmp.ge.s32.totalorder %s459_s12, 1  ;;  %p505_p1 = scmp.eq.s32.totalorder %s286_s16, 0 }
   0x6   : > { %p89_p2 = scmp.lt.s32.totalorder %s459_s12, 3  ;;  %p510_p3 = scmp.ne.s32.totalorder %s286_s16, 0 }
   0x7   : > { %s461_s20 = smov [#allocation2]   ;;  %s462_s22 = smov 128  }
   0x8   : > { %p514_p4 = pnand %p287_p0, %p89_p2  ;;  %s102_s21 = sshll.u32 %s461_s20, 4  ;;  %s103_s21 = int_to_ptr.vmem [resolvable:$true] %s102_s21 }
   0x9   : > { %s463_s23 = smov 8   ;;  %s523_s24 = sadd.s32 1, %s459_s12  }
   0xa   : > { %p312_p5 = pneg %p514_p4  ;;  %s41_s25 = ssub.s32 %s459_s12, %s523_s24 }
   0xb   : > { %s44_s26 = sadd.s32 1, %s455_s11  ;;  %p42_p7 = scmp.eq.s32.totalorder %s41_s25, 0 }
   0xc   : > { %p313_p6 = pnand %p312_p5, %p505_p1  ;;  %p51_p8 = scmp.ne.s32.totalorder %s455_s11, %s451_s10 }
   0xd   : > { %p52_p9 = scmp.eq.s32.totalorder %s459_s12, 0  ;;  %p57_p10 = scmp.ne.s32.totalorder %s451_s10, %s447_s9 }
   0xe   : > { %315 = dma.hbm_to_vmem [thread:$0]  (!%p313_p6), %s101_s15, 256, %s103_s21, [#allocation3], %s462_s22, %s462_s22, %s463_s23  }
   0xf   : > { %s533_s27 = scalar_select %p42_p7, %s455_s11, %s44_s26  }
  0x10   : > { %p53_p11 = por %p52_p9, %p51_p8  ;;  %p537_p12 = por %p505_p1, %p57_p10 }
  0x11   : > { %p321_p13 = scmp.lt.s32.totalorder %s459_s12, 2  ;;  %s116_s29 = sand.u32 1, %s455_s11  }
  0x12   : > { %s290_s30 = sshll.u32 %s116_s29, 3  ;;  %s291_s3 = sshll.u32 %s459_s12, 3 }
  0x13   : > { %s124_s6 = scalar_lea.hbm %s609_s1, %s291_s3  ;;  %s120_s7 = scalar_lea.vmem [#allocation4], %s290_s30 }
  0x14   : > { %s128_s8 = sshll.u32 %s120_s7, 4  ;;  %s126_s13 = sshll.u32 %s124_s6, 4  ;;  %s129_s8 = int_to_ptr.vmem [resolvable:$true] %s128_s8  ;;  %s127_s13 = int_to_ptr.hbm [resolvable:$true] %s126_s13 }
  0x15   : > { %p547_p0 = pnand %p321_p13, %p53_p11  ;;  %s117_s14 = scalar_lea.sflag [#allocation5], %s116_s29 }
  0x16   : > { %s391_s15 = sshra.s32 %s127_s13, 4  ;;  %s398_s21 = scalar_lea.hbm %s609_s1, 16  ;;  %s392_s15 = int_to_ptr.hbm [resolvable:$true] %s391_s15 }
  0x17   : > { %s393_s16 = scalar_lea.hbm %s392_s15, 8  ;;  %p395_p5 = pneg %p547_p0 }
  0x18   : > { %p394_p2 = scmp.ne.s32.totalorder %s392_s15, %s393_s16  ;;  %p399_p8 = scmp.lt.s32.totalorder %s392_s15, %s609_s1 }
  0x19   : > { %p400_p9 = scmp.lt.s32.totalorder %s398_s21, %s393_s16 }
  0x1a   : > { %p396_p6 = pnand %p395_p5, %p394_p2 }
  0x1b   : > { %p401_p10 = por %p400_p9, %p399_p8 }
  0x1c   : > { %p397_p7 = pneg %p396_p6 }
  0x1e   : > { %p402_p11 = pnand %p401_p10, %p397_p7 }
  0x20   : > { %405 = shalt.err (!%p402_p11)
}
  0x21   : > { %319 = dma.hbm_to_vmem [thread:$0]  (!%p547_p0), %s127_s13, 128, %s129_s8, %s117_s14  }
  0x22   : > { %137 = sbr.rel (%p514_p4) target bundleno = 433 (0x1b1), region = 28 }
  0x27   : > { %438 = dma.done.wait (%p505_p1), [#allocation3], 256  }
  0x28   : > { %440 = vsyncadd (%p505_p1), [#allocation3], 4294967040  ;;  %s144_s25 = sand.u32 1, %s451_s10  }
  0x29   : > { %s294_s26 = sshll.u32 %s144_s25, 3  ;;  %s145_s29 = scalar_lea.sflag [#allocation5], %s144_s25 }
  0x2a   : > { %s148_s30 = scalar_lea.vmem [#allocation4], %s294_s26 }
  0x2b   : > { %442 = dma.done.wait (%p537_p12), %s145_s29, 128  }
  0x2c   : > { %444 = vsyncadd (%p537_p12), %s145_s29, 4294967168  ;;  %168 = sbr.rel (%p510_p3) target bundleno = 52 (0x34), region = 40 }
  0x31   : > { %vm169_vm0 = vcmask 15360   ;;  %v464_v0 = vmov 0.0  }
  0x32   : > { %170 = vst.msk [vmem:[%s610_s2] sm:$0xff] %vm169_vm0, %v464_v0 }
  0x33   : > { %171 = vst.msk [vmem:[%s610_s2 + $0x8] sm:$0xff] %vm169_vm0, %v464_v0 }
  0x34 PF: > { %v172_v1 = vld [vmem:[%s148_s30] sm:$0xff]  ;;  %s465_s5 = smov 127   ;;  %s466_s6 = smov 1   ;;  %vm182_vm1 = vcmask 1039360   ;;  %vm177_vm2 = vcmask 7168   ;;  %v184_v3 = vld [vmem:[#allocation2] sm:$0xff] }
  0x35   : > { %179 = vrot.lane.b32.xlu0 %v172_v1, %s465_s5  ;;  %vm297_vm3 = vmneg %vm177_vm2  ;;  %vm186_vm4 = vcmask 195584   ;;  %v185_v4 = vld [vmem:[#allocation2 + $0x8] sm:$0xff]  ;;  %vm232_vm5 = vcmask 15360  }
  0x39   : > { %v226_v11 = vld [vmem:[%s610_s2] sm:$0xff] }
  0x3a   : > { %v227_v15 = vld [vmem:[%s610_s2 + $0x8] sm:$0xff] }
  0x3d   : > { %174 = vrot.lane.b32.xlu0 %v172_v1, %s466_s6 }
  0xa7   : > { %v180_v2 = vpop.permute.xlu0 %179 }
  0xa8   : > { %296 = vmatpush.msk.msra.mxu0 %vm182_vm1, %v180_v2  ;;  %303 = vmatpush.msk.msra.mxu1 %vm182_vm1, %v180_v2 }
  0xaa   : > { %207 = vmatpush.msra.mxu0 %v172_v1  ;;  %304 = vmatpush.msra.mxu1 %v172_v1 }
  0xaf   : > { %v175_v5 = vpop.permute.xlu0 %174 }
  0xb0   : > { %298 = vmatpush.msk.msra.mxu0 %vm297_vm3, %v175_v5  ;;  %305 = vmatpush.msk.msra.mxu1 %vm297_vm3, %v175_v5 }
  0xb1   : > { %299 = vmatmul.msk.f32.vlgmr.msra.gmra.mxu0 %vm186_vm4, %v184_v3  ;;  %300 = vmatmul.msk.f32.vlgmr.msra.gmra.mxu1 %vm186_vm4, %v185_v4 }
 0x12e   : > { %v210_v6 = vpop.f32.mrf.mxu0  ;;  %v213_v8 = vpop.f32.mrf.mxu1 }
 0x12f   : > { %216 = vadd.xlane.f32.xlu1 %v210_v6  ;;  %v220_v7 = vmul.f32 %v210_v6, %v210_v6  ;;  %v221_v9 = vmul.f32 %v213_v8, %v213_v8 }
 0x131   : > { %222 = vadd.xlane.f32.xlu2 %v220_v7 }
 0x137   : > { %218 = vadd.xlane.f32.xlu1 %v213_v8 }
 0x139   : > { %224 = vadd.xlane.f32.xlu2 %v221_v9 }
 0x1a2   : > { %v217_v10 = vpop.xlane.xlu1 %216 }
 0x1a4   : > { %v223_v12 = vpop.xlane.xlu2 %222 }
 0x1a5   : > { %v228_v13 = vsel %vm177_vm2, %v217_v10, %v223_v12 }
 0x1a6   : > { %v230_v14 = vadd.f32 %v228_v13, %v226_v11 }
 0x1a8   : > { %233 = vst.msk [vmem:[%s610_s2] sm:$0xff] %vm232_vm5, %v230_v14 }
 0x1aa   : > { %v219_v16 = vpop.xlane.xlu1 %218 }
 0x1ac   : > { %v225_v17 = vpop.xlane.xlu2 %224 }
 0x1ad   : > { %v229_v18 = vsel %vm177_vm2, %v219_v16, %v225_v17 }
 0x1ae   : > { %v231_v19 = vadd.f32 %v229_v18, %v227_v15 }
 0x1b0   : > { %234 = vst.msk [vmem:[%s610_s2 + $0x8] sm:$0xff] %vm232_vm5, %v231_v19 }
 0x1b1 PF: > { %p13_p1 = scmp.ge.s32.totalorder %s523_s24, 4   ;;  %s616_s9 = smov %s451_s10 }
 0x1b2   : > { %s617_s10 = smov %s455_s11  ;;  %s618_s11 = smov %s533_s27 }
 0x1b3   : > { %s619_s12 = smov %s523_s24  ;;  %15 = sbr.rel (!%p13_p1) target bundleno = 4 (0x4), region = 73 }
 0x1b8   :  { %246 = vsyncpa [#allocation3], 1 }
 0x1b9   :  { %248 = vsyncpa [#allocation3 + $0x1], 1 }
 0x1ba   :  { %249 = vsyncpa [#allocation5], 1 }
 0x1bb   :  { %251 = vsyncpa [#allocation5 + $0x1], 1 }

</bundles_post_ra>
